<compile_context>
chip_gen: v7x
topology: tpu7x:2x2x1
jax: 0.10.0
libtpu: 0.0.40
codegen_flags: <defaults>
</compile_context>

<pallas_src>
import random
import jax
import jax.numpy as jnp
from jax.experimental import pallas as pl
from jax.experimental.pallas import tpu as pltpu

# ---------------- model / problem sizes (small, consistent with the module) --
N_PER_BATCH = 8          # per-loader micro-batch size
C, H, W = 4, 16, 16      # NCHW input
D = C * H * W            # flattened feature dim = 1024
NUM_CLASSES = 8
C_PAD = 128              # class dim padded to exactly one lane width


# ------------------------------- Pallas kernel -------------------------------
def _net_ce_kernel(x_ref, w_ref, b_ref, lbl_ref, loss_ref):
    """Fused linear forward + cross-entropy for ONE meta-domain row block.

    x_ref   : (TM, D)       bf16  stacked activations of this domain's micro-batches
    w_ref   : (D, C_PAD)    bf16  resident weight   (padded classes are zero)
    b_ref   : (1, C_PAD)    f32   resident bias     (padded classes are -1e30)
    lbl_ref : (TM, 1)       int32 labels; -1 marks padded rows
    loss_ref: (1, 8, C_PAD) f32   per-block loss (sum NLL / N_PER_BATCH),
                                  broadcast over a full vreg -> unmasked store.
    """
    # MXU: (TM, D) bf16 @ (D, C_PAD) bf16 -> (TM, C_PAD) f32 accumulation.
    logits = jnp.dot(x_ref[...], w_ref[...], preferred_element_type=jnp.float32)
    logits = logits + b_ref[...]          # padded classes carry bias = -1e30

    # f32 epilogue: numerically-stable log-sum-exp (VPU / EUP / XLU).
    m = jnp.max(logits, axis=-1, keepdims=True)                       # (TM, 1)
    lse = jnp.log(jnp.sum(jnp.exp(logits - m), axis=-1, keepdims=True)) + m

    # Label term from int32 labels (no host one-hot).  Labels are assumed to
    # lie in [0, NUM_CLASSES); -1 marks padded rows and matches no column.
    cls = jax.lax.broadcasted_iota(jnp.int32, logits.shape, 1)        # (TM, C_PAD)
    lbl = lbl_ref[...]                                                # (TM, 1)
    lbl_logit = jnp.sum(jnp.where(cls == lbl, logits, 0.0),
                        axis=-1, keepdims=True)                       # (TM, 1)
    valid = (lbl >= 0).astype(jnp.float32)
    nll = (lse - lbl_logit) * valid                                   # (TM, 1)

    # In-kernel reduction to a per-block (= per-domain) scalar, pre-scaled by
    # the per-micro-batch mean factor 1/N_PER_BATCH, stored lane-dense.
    partial = jnp.sum(nll, axis=0, keepdims=True) * (1.0 / N_PER_BATCH)  # (1, 1)
    loss_ref[...] = jnp.broadcast_to(partial.reshape(1, 1, 1), loss_ref.shape)


# ------------------------- fused multi-domain forward ------------------------
@jax.jit
def _meta_forward_losses(xs_by_domain, lbls_by_domain, w_pad, b_pad):
    """All meta-train domains' forward + CE in ONE pallas_call.

    xs_by_domain  : tuple (per domain) of tuples (per micro-batch) of (N,C,H,W) f32
    lbls_by_domain: same nesting, (N,) integer labels
    w_pad         : (D, C_PAD) bf16   (columns >= NUM_CLASSES are zero)
    b_pad         : (1, C_PAD) f32    (columns >= NUM_CLASSES are -1e30)
    Returns (n_domains,) f32: per-domain sum of per-micro-batch mean CE.
    """
    n_dom = len(xs_by_domain)
    rows_per_dom = sum(x.shape[0] for x in xs_by_domain[0])
    assert all(sum(x.shape[0] for x in dom) == rows_per_dom for dom in xs_by_domain)

    # concat + flatten + bf16 cast fused inside this one jit (single HBM pass).
    x_flat = jnp.concatenate(
        [x.reshape(x.shape[0], -1) for dom in xs_by_domain for x in dom],
        axis=0).astype(jnp.bfloat16)                                   # (n_dom*rows, D)
    l_flat = jnp.concatenate(
        [l for dom in lbls_by_domain for l in dom], axis=0).astype(jnp.int32)

    # Right-sized block: one block == one domain's stacked micro-batches,
    # rounded up to a sublane multiple (32 rows here -> no padding at all).
    tm = ((rows_per_dom + 7) // 8) * 8
    if tm != rows_per_dom:
        x_flat = jnp.pad(x_flat.reshape(n_dom, rows_per_dom, D),
                         ((0, 0), (0, tm - rows_per_dom), (0, 0))
                         ).reshape(n_dom * tm, D)
        l_flat = jnp.pad(l_flat.reshape(n_dom, rows_per_dom),
                         ((0, 0), (0, tm - rows_per_dom)),
                         constant_values=-1).reshape(n_dom * tm)
    lbl = l_flat.reshape(n_dom * tm, 1)

    cost = pl.CostEstimate(
        flops=2 * n_dom * tm * D * C_PAD,
        transcendentals=n_dom * tm * C_PAD,                 # exp in the softmax
        bytes_accessed=(n_dom * tm * D * 2 + D * C_PAD * 2  # bf16 x, W
                        + C_PAD * 4 + n_dom * tm * 4        # bias, labels
                        + n_dom * 8 * C_PAD * 4))           # loss output

    out = pl.pallas_call(
        _net_ce_kernel,
        out_shape=jax.ShapeDtypeStruct((n_dom, 8, C_PAD), jnp.float32),
        grid_spec=pltpu.PrefetchScalarGridSpec(
            num_scalar_prefetch=0,
            grid=(n_dom,),                                   # >= 2 blocks -> both v7x TCs
            in_specs=[
                pl.BlockSpec((tm, D), lambda i: (i, 0)),     # this domain's rows
                pl.BlockSpec((D, C_PAD), lambda i: (0, 0)),  # W resident in VMEM
                pl.BlockSpec((1, C_PAD), lambda i: (0, 0)),  # bias resident
                pl.BlockSpec((tm, 1), lambda i: (i, 0)),     # int32 labels
            ],
            out_specs=pl.BlockSpec((1, 8, C_PAD), lambda i: (i, 0, 0)),
        ),
        compiler_params=pltpu.CompilerParams(
            dimension_semantics=("parallel",)),
        cost_estimate=cost,
    )(x_flat, w_pad, b_pad, lbl)

    return out[:, 0, 0]                                      # (n_dom,) per-domain loss


def _ref_domain_losses(xs_by_domain, lbls_by_domain, w, b):
    """Pure-JAX f32 reference: per-domain sum of per-micro-batch mean CE."""
    out = []
    for xs, ls in zip(xs_by_domain, lbls_by_domain):
        tot = jnp.zeros((), jnp.float32)
        for x, l in zip(xs, ls):
            logits = x.reshape(x.shape[0], -1) @ w + b
            m = jnp.max(logits, axis=-1, keepdims=True)
            lse = (jnp.log(jnp.sum(jnp.exp(logits - m), axis=-1, keepdims=True)) + m)[:, 0]
            picked = jnp.take_along_axis(logits, l.astype(jnp.int32)[:, None], axis=-1)[:, 0]
            tot = tot + jnp.mean(lse - picked)
        out.append(tot)
    return jnp.stack(out)


# ------------------------------ MetaLearner glue ------------------------------
class MetaLearnerPallas:
    def __init__(self, meta_train_data, meta_test_data,
                 meta_train_batch_size=4, meta_test_batch_size=2, seed=0):
        # "loaders" are lists of (x, label) batches per domain
        self.meta_train_data = meta_train_data
        self.meta_test_data = meta_test_data
        self.train_loader_len = len(meta_train_data)
        self.test_loader_len = len(meta_test_data)
        self.meta_train_batch_size = meta_train_batch_size
        self.meta_test_batch_size = meta_test_batch_size
        self._train_cursor = [0] * self.train_loader_len

        # deterministic parameter init (shapes from the linear stand-in net)
        kw, kb = jax.random.split(jax.random.PRNGKey(seed))
        self.w = (jax.random.normal(kw, (D, NUM_CLASSES), jnp.float32)
                  * (1.0 / jnp.sqrt(D)))
        self.b = jax.random.normal(kb, (1, NUM_CLASSES), jnp.float32) * 0.01

        # lane-dense, bf16 kernel-side parameter views (built once):
        #  - weight columns >= NUM_CLASSES are zero
        #  - bias columns  >= NUM_CLASSES are -1e30 so exp() underflows to 0
        w_pad = jnp.zeros((D, C_PAD), jnp.float32).at[:, :NUM_CLASSES].set(self.w)
        b_pad = jnp.full((1, C_PAD), -1e30, jnp.float32).at[:, :NUM_CLASSES].set(self.b)
        self.w_pad = w_pad.astype(jnp.bfloat16)
        self.b_pad = b_pad                      # bias stays f32 for the epilogue

        random.seed(seed)  # deterministic domain sampling

    def gen_rand_num(self, mask_num, high, low=1):
        rand_num = mask_num
        while rand_num == mask_num:
            rand_num = random.randint(low, high)
        return rand_num

    def get_train_data(self, index):
        batches = self.meta_train_data[index]
        cur = self._train_cursor[index]
        self._train_cursor[index] = (cur + 1) % len(batches)  # StopIteration -> re-iter
        return batches[cur]

    def forward(self, epoches):
        if self.train_loader_len < 2:
            return (0, 0.0, 0)
        # Host-side domain sampling / data collection (same loop structure as
        # the reference), then ONE fused kernel launch for all domains.
        xs_by_dom, lbls_by_dom = [], []
        for train_domain_id in range(1, self.train_loader_len):
            train_batch_nums = [
                self.gen_rand_num(train_domain_id, self.train_loader_len - 1)
                for _ in range(int(self.meta_train_batch_size / 2))
            ]
            train_batch_nums.extend(
                [0 for _ in range(int(self.meta_train_batch_size / 2))])
            # test_batch_nums computed for structural fidelity (unused, as in
            # the reference forward)
            _ = [random.choice([0, train_domain_id, self.test_loader_len - 1])
                 for _ in range(self.meta_test_batch_size)]

            xs, ls = [], []
            for index in train_batch_nums:
                x, label = self.get_train_data(index)
                xs.append(x)
                ls.append(label)
            xs_by_dom.append(tuple(xs))
            lbls_by_dom.append(tuple(ls))

        # ONE pallas_call over every domain's micro-batches; concat / pad /
        # bf16 cast all live inside the same jit (no eager per-domain ops).
        losses = _meta_forward_losses(tuple(xs_by_dom), tuple(lbls_by_dom),
                                      self.w_pad, self.b_pad)

        # The reference resets loss_meta_train at the top of every domain loop,
        # so only the LAST domain's accumulated sum of per-micro-batch mean CE
        # is returned.  Single host transfer for the whole forward.
        loss_meta_train = float(losses[-1])
        # TODO(synk): backward / GradScaler / Adam optimizer step and StepLR
        # scheduler are host-side training-loop state with no Pallas forward
        # equivalent; only the forward + loss is kernelized.
        return (0, loss_meta_train, 0)


# ----------------------------------- main ------------------------------------
if __name__ == "__main__":
    key = jax.random.PRNGKey(0)
    n_train_domains, n_test_domains, batches_per_domain = 3, 3, 2

    def make_domains(key, n_domains):
        data = []
        for _ in range(n_domains):
            batches = []
            for _ in range(batches_per_domain):
                key, kx, kl = jax.random.split(key, 3)
                x = jax.random.normal(kx, (N_PER_BATCH, C, H, W), jnp.float32)
                label = jax.random.randint(kl, (N_PER_BATCH,), 0, NUM_CLASSES)
                batches.append((x, label))
            data.append(batches)
        return key, data

    key, meta_train_data = make_domains(key, n_train_domains)
    key, meta_test_data = make_domains(key, n_test_domains)

    learner = MetaLearnerPallas(meta_train_data, meta_test_data,
                                meta_train_batch_size=4,
                                meta_test_batch_size=2, seed=0)

    # 1) sanity: run the fused kernel once on one domain's data and check it
    #    against a pure-JAX f32 reference (bf16 MXU inputs => loose tolerance).
    xs0 = tuple(x for (x, _) in meta_train_data[0])
    ls0 = tuple(l for (_, l) in meta_train_data[0])
    got = _meta_forward_losses((xs0,), (ls0,), learner.w_pad, learner.b_pad)
    jax.block_until_ready(got)
    ref = _ref_domain_losses((xs0,), (ls0,), learner.w, learner.b)
    assert jnp.allclose(got, ref, rtol=2e-2, atol=2e-2), (got, ref)

    # 2) full forward: one pallas_call covering every meta-train domain,
    #    single host read of the returned loss at the end.
    _, loss_meta_train, _ = learner.forward(epoches=1)
    assert loss_meta_train == loss_meta_train and loss_meta_train > 0.0  # finite, positive

    print("KERNEL_OK")
</pallas_src>

<mosaic_0001>
module attributes {stable_mosaic.version = 11 : i64} {
  func.func @_net_ce_kernel(%arg0: i32, %arg1: memref<16x1024xbf16, #tpu.memory_space<vmem>>, %arg2: memref<1024x128xbf16, #tpu.memory_space<vmem>>, %arg3: memref<1x128xf32, #tpu.memory_space<vmem>>, %arg4: memref<16x1xi32, #tpu.memory_space<vmem>>, %arg5: memref<1x8x128xf32, #tpu.memory_space<vmem>>) attributes {dimension_semantics = [#tpu.dimension_semantics<parallel>], iteration_bounds = array<i64: 1>, scalar_prefetch = 0 : i64, scratch_operands = 0 : i64, tpu.core_type = #tpu.core_type<tc>, window_params = [{transform_indices = @transform_0, window_bounds = array<i64: 16, 1024>}, {pipeline_mode = #tpu.pipeline_mode<synchronous>, transform_indices = @transform_1, window_bounds = array<i64: 1024, 128>}, {pipeline_mode = #tpu.pipeline_mode<synchronous>, transform_indices = @transform_2, window_bounds = array<i64: 1, 128>}, {transform_indices = @transform_3, window_bounds = array<i64: 16, 1>}, {transform_indices = @transform_4, window_bounds = array<i64: 1, 8, 128>}]} {
    %c0 = arith.constant 0 : index
    %c0_0 = arith.constant 0 : index
    %0 = vector.load %arg1[%c0, %c0_0] : memref<16x1024xbf16, #tpu.memory_space<vmem>>, vector<16x1024xbf16>
    %c0_1 = arith.constant 0 : index
    %c0_2 = arith.constant 0 : index
    %1 = vector.load %arg2[%c0_1, %c0_2] : memref<1024x128xbf16, #tpu.memory_space<vmem>>, vector<1024x128xbf16>
    %cst = arith.constant dense<0.000000e+00> : vector<16x128xf32>
    %2 = tpu.matmul %0, %1, %cst {dimension_numbers = #tpu.dot_dimension_numbers<[1], [0], [0], [1], [0, 0, 1, 1], [], []>} : vector<16x1024xbf16>, vector<1024x128xbf16>, vector<16x128xf32> -> vector<16x128xf32>
    %c0_3 = arith.constant 0 : index
    %c0_4 = arith.constant 0 : index
    %3 = vector.load %arg3[%c0_3, %c0_4] : memref<1x128xf32, #tpu.memory_space<vmem>>, vector<1x128xf32>
    %4 = vector.broadcast %3 : vector<1x128xf32> to vector<16x128xf32>
    %5 = arith.addf %2, %4 : vector<16x128xf32>
    %cst_5 = arith.constant dense<0xFF800000> : vector<16xf32>
    %6 = vector.multi_reduction <maximumf>, %5, %cst_5 [1] : vector<16x128xf32> to vector<16xf32>
    %7 = vector.shape_cast %6 : vector<16xf32> to vector<16x1xf32>
    %8 = vector.broadcast %7 : vector<16x1xf32> to vector<16x128xf32>
    %9 = arith.subf %5, %8 : vector<16x128xf32>
    %10 = math.exp %9 : vector<16x128xf32>
    %cst_6 = arith.constant dense<0.000000e+00> : vector<16xf32>
    %11 = vector.multi_reduction <add>, %10, %cst_6 [1] : vector<16x128xf32> to vector<16xf32>
    %12 = vector.shape_cast %11 : vector<16xf32> to vector<16x1xf32>
    %13 = math.log %12 : vector<16x1xf32>
    %14 = arith.addf %13, %7 : vector<16x1xf32>
    %15 = tpu.iota {dimensions = array<i32: 1>} : vector<16x128xi32>
    %c0_7 = arith.constant 0 : index
    %c0_8 = arith.constant 0 : index
    %16 = vector.load %arg4[%c0_7, %c0_8] : memref<16x1xi32, #tpu.memory_space<vmem>>, vector<16x1xi32>
    %17 = vector.broadcast %16 : vector<16x1xi32> to vector<16x128xi32>
    %18 = arith.cmpi eq, %15, %17 : vector<16x128xi32>
    %cst_9 = arith.constant 0.000000e+00 : f32
    %19 = vector.broadcast %cst_9 : f32 to vector<16x128xf32>
    %20 = arith.select %18, %5, %19 : vector<16x128xi1>, vector<16x128xf32>
    %cst_10 = arith.constant dense<0.000000e+00> : vector<16xf32>
    %21 = vector.multi_reduction <add>, %20, %cst_10 [1] : vector<16x128xf32> to vector<16xf32>
    %22 = vector.shape_cast %21 : vector<16xf32> to vector<16x1xf32>
    %c0_i32 = arith.constant 0 : i32
    %23 = vector.broadcast %c0_i32 : i32 to vector<16x1xi32>
    %24 = arith.cmpi sge, %16, %23 : vector<16x1xi32>
    %25 = arith.extui %24 : vector<16x1xi1> to vector<16x1xi32>
    %26 = arith.sitofp %25 : vector<16x1xi32> to vector<16x1xf32>
    %27 = arith.subf %14, %22 : vector<16x1xf32>
    %28 = arith.mulf %27, %26 : vector<16x1xf32>
    %cst_11 = arith.constant dense<0.000000e+00> : vector<1xf32>
    %29 = vector.multi_reduction <add>, %28, %cst_11 [0] : vector<16x1xf32> to vector<1xf32>
    %30 = vector.shape_cast %29 : vector<1xf32> to vector<1x1xf32>
    %cst_12 = arith.constant 1.250000e-01 : f32
    %31 = vector.broadcast %cst_12 : f32 to vector<1x1xf32>
    %32 = arith.mulf %30, %31 : vector<1x1xf32>
    %33 = vector.shape_cast %32 : vector<1x1xf32> to vector<1x1x1xf32>
    %34 = vector.shape_cast %33 : vector<1x1x1xf32> to vector<1x1x1xf32>
    %35 = vector.broadcast %34 : vector<1x1x1xf32> to vector<1x8x128xf32>
    %c0_13 = arith.constant 0 : index
    %c0_14 = arith.constant 0 : index
    %c0_15 = arith.constant 0 : index
    %36 = vector.load %arg5[%c0_13, %c0_14, %c0_15] : memref<1x8x128xf32, #tpu.memory_space<vmem>>, vector<1x8x128xf32>
    tpu.vector_store %arg5[%c0_13, %c0_14, %c0_15], %35 {strides = array<i32>} : memref<1x8x128xf32, #tpu.memory_space<vmem>>, vector<1x8x128xf32>,
    return
  }
  func.func @transform_0(%arg0: i32) -> (i32, i32) {
    %c0_i32 = arith.constant 0 : i32
    %c0_i32_0 = arith.constant 0 : i32
    return %arg0, %c0_i32 : i32, i32
  }
  func.func @transform_1(%arg0: i32) -> (i32, i32) {
    %c0_i32 = arith.constant 0 : i32
    %c0_i32_0 = arith.constant 0 : i32
    %c0_i32_1 = arith.constant 0 : i32
    return %c0_i32, %c0_i32_0 : i32, i32
  }
  func.func @transform_2(%arg0: i32) -> (i32, i32) {
    %c0_i32 = arith.constant 0 : i32
    %c0_i32_0 = arith.constant 0 : i32
    %c0_i32_1 = arith.constant 0 : i32
    return %c0_i32, %c0_i32_0 : i32, i32
  }
  func.func @transform_3(%arg0: i32) -> (i32, i32) {
    %c0_i32 = arith.constant 0 : i32
    %c0_i32_0 = arith.constant 0 : i32
    return %arg0, %c0_i32 : i32, i32
  }
  func.func @transform_4(%arg0: i32) -> (i32, i32, i32) {
    %c0_i32 = arith.constant 0 : i32
    %c0_i32_0 = arith.constant 0 : i32
    %c0_i32_1 = arith.constant 0 : i32
    return %arg0, %c0_i32, %c0_i32_0 : i32, i32, i32
  }
}

</mosaic_0001>

<bundles_post_ra>
// kernel: _meta_forward_losses.1
= control target key start
LH: loop header
LB: loop body
LE: loop exit
PB: predicated region body
PF: predicated region fallthrough
CT: control target
= control target key end

     0   :  { %v1057_v1 = vmov 0   ;;  %vm797_vm4 = vcmask 7168   ;;  %s1320_s1 = inlined_call_operand.vmem [shape: bf16[1024,128], index: 1, kind: input, shape index: {}]   ;;  %s1321_s0 = inlined_call_operand.vmem [shape: bf16[16,1024], index: 0, kind: input, shape index: {}]   ;;  %s1322_s3 = inlined_call_operand.vmem [shape: s32[16,1], index: 3, kind: input, shape index: {}]   ;;  %s1323_s2 = inlined_call_operand.vmem [shape: f32[1,128], index: 2, kind: input, shape index: {}]   ;;  %s1324_s4 = inlined_call_operand.vmem [shape: f32[1,8,128], index: 4, kind: output, shape index: {}]  }
   0x1   :  { %v985_v0 = vld [vmem:[%s1320_s1 + $0x40] sm:$0xff]   ;;  %983 = vset.pattern.permute.xlu1 %v1057_v1  ;;  %984 = vset.pattern.permute.xlu0 %v1057_v1  ;;  %v989_v5 = vld [vmem:[%s1320_s1 + $0x48] sm:$0xff]   ;;  %v993_v9 = vld [vmem:[%s1320_s1 + $0x50] sm:$0xff]  }
   0x2   :  { %v986_v2 = vld [vmem:[%s1320_s1 + $0xc0] sm:$0xff]   ;;  %893 = vmatprep.subr.bf16.mxu0 %v985_v0  ;;  %v990_v6 = vld [vmem:[%s1320_s1 + $0xc8] sm:$0xff]   ;;  %v994_v10 = vld [vmem:[%s1320_s1 + $0xd0] sm:$0xff]  }
   0x3   :  { %v987_v3 = vld [vmem:[%s1320_s1] sm:$0xff]   ;;  %915 = vmatprep.subr.bf16.mxu1 %v986_v2  ;;  %v991_v7 = vld [vmem:[%s1320_s1 + $0x8] sm:$0xff]   ;;  %v995_v11 = vld [vmem:[%s1320_s1 + $0x10] sm:$0xff]  }
   0x4   :  { %v988_v4 = vld [vmem:[%s1320_s1 + $0x80] sm:$0xff]   ;;  %894 = vmatpush3.bf16.msra.mxu0 %v987_v3  ;;  %v992_v8 = vld [vmem:[%s1320_s1 + $0x88] sm:$0xff]   ;;  %v996_v12 = vld [vmem:[%s1320_s1 + $0x90] sm:$0xff]  }
   0x5   :  { %916 = vmatpush3.bf16.msra.mxu1 %v988_v4  ;;  %895 = vmatprep.subr.bf16.mxu0 %v989_v5  ;;  %v997_v13 = vld [vmem:[%s1320_s1 + $0x58] sm:$0xff]   ;;  %v1001_v17 = vld [vmem:[%s1320_s1 + $0x60] sm:$0xff]   ;;  %v1005_v21 = vld [vmem:[%s1320_s1 + $0x68] sm:$0xff]  }
   0x6   :  { %917 = vmatprep.subr.bf16.mxu1 %v990_v6  ;;  %v998_v14 = vld [vmem:[%s1320_s1 + $0xd8] sm:$0xff]   ;;  %v1002_v18 = vld [vmem:[%s1320_s1 + $0xe0] sm:$0xff]   ;;  %v1006_v22 = vld [vmem:[%s1320_s1 + $0xe8] sm:$0xff]  }
   0x7   :  { %v999_v15 = vld [vmem:[%s1320_s1 + $0x18] sm:$0xff]   ;;  %v1003_v19 = vld [vmem:[%s1320_s1 + $0x20] sm:$0xff]   ;;  %v1007_v23 = vld [vmem:[%s1320_s1 + $0x28] sm:$0xff]  }
   0x8   :  { %896 = vmatpush3.bf16.msra.mxu0 %v991_v7  ;;  %v1000_v16 = vld [vmem:[%s1320_s1 + $0x98] sm:$0xff]   ;;  %v1004_v20 = vld [vmem:[%s1320_s1 + $0xa0] sm:$0xff]   ;;  %v1008_v24 = vld [vmem:[%s1320_s1 + $0xa8] sm:$0xff]  }
   0x9   :  { %918 = vmatpush3.bf16.msra.mxu1 %v992_v8  ;;  %897 = vmatprep.subr.bf16.mxu0 %v993_v9  ;;  %v1009_v25 = vld [vmem:[%s1320_s1 + $0x70] sm:$0xff]   ;;  %v1013_v29 = vld [vmem:[%s1320_s1 + $0x78] sm:$0xff]   ;;  %v18_v33 = vld [vmem:[%s1321_s0] sm:$0xff] }
   0xa   :  { %919 = vmatprep.subr.bf16.mxu1 %v994_v10  ;;  %v1010_v26 = vld [vmem:[%s1320_s1 + $0xf0] sm:$0xff]   ;;  %v1014_v30 = vld [vmem:[%s1320_s1 + $0xf8] sm:$0xff]   ;;  %v22_v34 = vld [vmem:[%s1321_s0 + $0x20] sm:$0xff] }
   0xb   :  { %v1011_v27 = vld [vmem:[%s1320_s1 + $0x30] sm:$0xff]   ;;  %v1015_v31 = vld [vmem:[%s1320_s1 + $0x38] sm:$0xff]   ;;  %v19_v35 = vld [vmem:[%s1321_s0 + $0x8] sm:$0xff]  ;;  %v819_v36 = vcombine.low %v18_v33, %v22_v34  ;;  %v820_v37 = vcombine.high %v18_v33, %v22_v34 }
   0xc   :  { %898 = vmatpush3.bf16.msra.mxu0 %v995_v11  ;;  %v1012_v28 = vld [vmem:[%s1320_s1 + $0xb0] sm:$0xff]   ;;  %v1016_v32 = vld [vmem:[%s1320_s1 + $0xb8] sm:$0xff]   ;;  %v23_v38 = vld [vmem:[%s1321_s0 + $0x28] sm:$0xff] }
   0xd   :  { %920 = vmatpush3.bf16.msra.mxu1 %v996_v12  ;;  %899 = vmatprep.subr.bf16.mxu0 %v997_v13  ;;  %v821_v39 = vcombine.low %v19_v35, %v23_v38  ;;  %v822_v40 = vcombine.high %v19_v35, %v23_v38  ;;  %v1017_v41 = vld [vmem:[%s1320_s1 + $0x140] sm:$0xff]   ;;  %v1021_v45 = vld [vmem:[%s1320_s1 + $0x148] sm:$0xff]   ;;  %v1025_v49 = vld [vmem:[%s1320_s1 + $0x150] sm:$0xff]  }
   0xe   :  { %921 = vmatprep.subr.bf16.mxu1 %v998_v14  ;;  %617 = vmatprep.mubr.bf16.mxu0 %v820_v37  ;;  %v1018_v42 = vld [vmem:[%s1320_s1 + $0x1c0] sm:$0xff]   ;;  %v1022_v46 = vld [vmem:[%s1320_s1 + $0x1c8] sm:$0xff]   ;;  %v1026_v50 = vld [vmem:[%s1320_s1 + $0x1d0] sm:$0xff]  }
   0xf   :  { %658 = vmatprep.mubr.bf16.mxu1 %v822_v40  ;;  %v1019_v43 = vld [vmem:[%s1320_s1 + $0x100] sm:$0xff]   ;;  %v1023_v47 = vld [vmem:[%s1320_s1 + $0x108] sm:$0xff]   ;;  %v1027_v51 = vld [vmem:[%s1320_s1 + $0x110] sm:$0xff]  }
  0x10   :  { %900 = vmatpush3.bf16.msra.mxu0 %v999_v15  ;;  %v1020_v44 = vld [vmem:[%s1320_s1 + $0x180] sm:$0xff]   ;;  %v1024_v48 = vld [vmem:[%s1320_s1 + $0x188] sm:$0xff]   ;;  %v1028_v52 = vld [vmem:[%s1320_s1 + $0x190] sm:$0xff]  }
  0x11   :  { %922 = vmatpush3.bf16.msra.mxu1 %v1000_v16  ;;  %901 = vmatprep.subr.bf16.mxu0 %v1001_v17  ;;  %v1029_v53 = vld [vmem:[%s1320_s1 + $0x158] sm:$0xff]   ;;  %v1033_v57 = vld [vmem:[%s1320_s1 + $0x160] sm:$0xff]   ;;  %v1037_v61 = vld [vmem:[%s1320_s1 + $0x168] sm:$0xff]  }
  0x12   :  { %923 = vmatprep.subr.bf16.mxu1 %v1002_v18  ;;  %v1030_v54 = vld [vmem:[%s1320_s1 + $0x1d8] sm:$0xff]   ;;  %v1034_v58 = vld [vmem:[%s1320_s1 + $0x1e0] sm:$0xff]   ;;  %v1038_v62 = vld [vmem:[%s1320_s1 + $0x1e8] sm:$0xff]  }
  0x13   :  { %v1031_v55 = vld [vmem:[%s1320_s1 + $0x118] sm:$0xff]   ;;  %v1035_v59 = vld [vmem:[%s1320_s1 + $0x120] sm:$0xff]   ;;  %v1039_v63 = vld [vmem:[%s1320_s1 + $0x128] sm:$0xff]  }
  0x14   :  { %902 = vmatpush3.bf16.msra.mxu0 %v1003_v19  ;;  %v1032_v56 = vld [vmem:[%s1320_s1 + $0x198] sm:$0xff]   ;;  %v1036_v60 = vld [vmem:[%s1320_s1 + $0x1a0] sm:$0xff]   ;;  %v1040_v0 = vld [vmem:[%s1320_s1 + $0x1a8] sm:$0xff]  }
  0x15   :  { %924 = vmatpush3.bf16.msra.mxu1 %v1004_v20  ;;  %903 = vmatprep.subr.bf16.mxu0 %v1005_v21  ;;  %v1041_v1 = vld [vmem:[%s1320_s1 + $0x170] sm:$0xff]   ;;  %v1045_v5 = vld [vmem:[%s1320_s1 + $0x178] sm:$0xff]   ;;  %v1303_v15 = vld [vmem:[%s1322_s3] sm:$0xff] }
  0x16   :  { %925 = vmatprep.subr.bf16.mxu1 %v1006_v22  ;;  %v1042_v2 = vld [vmem:[%s1320_s1 + $0x1f0] sm:$0xff]   ;;  %v1046_v6 = vld [vmem:[%s1320_s1 + $0x1f8] sm:$0xff]   ;;  %774 = vperm.xlu1 %983, %v1303_v15   ;;  %v1309_v18 = vld [vmem:[%s1322_s3 + $0x8] sm:$0xff]  ;;  %vm787_vm2 = vcmp.ge.s32.totalorder %v1303_v15, 0 }
  0x17   :  { %v1043_v3 = vld [vmem:[%s1320_s1 + $0x130] sm:$0xff]   ;;  %v1047_v7 = vld [vmem:[%s1320_s1 + $0x138] sm:$0xff]   ;;  %v818_v21 = vld [vmem:[%s1323_s2] ss:$0 sm:$0xff]  ;;  %vm788_vm3 = vcmp.ge.s32.totalorder %v1309_v18, 0 }
  0x18   :  { %904 = vmatpush3.bf16.msra.mxu0 %v1007_v23  ;;  %v1044_v4 = vld [vmem:[%s1320_s1 + $0x1b0] sm:$0xff]   ;;  %v1048_v8 = vld [vmem:[%s1320_s1 + $0x1b8] sm:$0xff]  }
  0x19   :  { %926 = vmatpush3.bf16.msra.mxu1 %v1008_v24  ;;  %905 = vmatprep.subr.bf16.mxu0 %v1009_v25  ;;  %v20_v9 = vld [vmem:[%s1321_s0 + $0x10] sm:$0xff]  ;;  %v21_v13 = vld [vmem:[%s1321_s0 + $0x18] sm:$0xff] }
  0x1a   :  { %927 = vmatprep.subr.bf16.mxu1 %v1010_v26  ;;  %v24_v10 = vld [vmem:[%s1321_s0 + $0x30] sm:$0xff]  ;;  %v25_v14 = vld [vmem:[%s1321_s0 + $0x38] sm:$0xff]  ;;  %777 = vperm.xlu1 %983, %v1309_v18  }
  0x1b   :  { %v823_v11 = vcombine.low %v20_v9, %v24_v10  ;;  %v824_v12 = vcombine.high %v20_v9, %v24_v10  ;;  %v825_v16 = vcombine.low %v21_v13, %v25_v14  ;;  %v826_v17 = vcombine.high %v21_v13, %v25_v14 }
  0x1c   :  { %906 = vmatpush3.bf16.msra.mxu0 %v1011_v27 }
  0x1d   :  { %928 = vmatpush3.bf16.msra.mxu1 %v1012_v28  ;;  %907 = vmatprep.subr.bf16.mxu0 %v1013_v29 }
  0x1e   :  { %929 = vmatprep.subr.bf16.mxu1 %v1014_v30 }
  0x20   :  { %908 = vmatpush3.bf16.msra.mxu0 %v1015_v31 }
  0x21   :  { %930 = vmatpush3.bf16.msra.mxu1 %v1016_v32  ;;  %937 = vmatprep.subr.bf16.mxu0 %v1017_v41 }
  0x22   :  { %959 = vmatprep.subr.bf16.mxu1 %v1018_v42 }
  0x23   :  { %618 = vmatmul.mubr.bf16.vlgmr.msra.gmra.mrb[0].mxu0 %v819_v36 }
  0x24   :  { %659 = vmatmul.mubr.bf16.vlgmr.msra.gmra.mrb[0].mxu1 %v821_v39  ;;  %938 = vmatpush3.bf16.msra.mxu0 %v1019_v43 }
  0x25   :  { %960 = vmatpush3.bf16.msra.mxu1 %v1020_v44  ;;  %939 = vmatprep.subr.bf16.mxu0 %v1021_v45 }
  0x26   :  { %961 = vmatprep.subr.bf16.mxu1 %v1022_v46  ;;  %699 = vmatprep.mubr.bf16.mxu0 %v824_v12 }
  0x27   :  { %740 = vmatprep.mubr.bf16.mxu1 %v826_v17 }
  0x28   :  { %940 = vmatpush3.bf16.msra.mxu0 %v1023_v47 }
  0x29   :  { %962 = vmatpush3.bf16.msra.mxu1 %v1024_v48  ;;  %941 = vmatprep.subr.bf16.mxu0 %v1025_v49 }
  0x2a   :  { %963 = vmatprep.subr.bf16.mxu1 %v1026_v50 }
  0x2c   :  { %942 = vmatpush3.bf16.msra.mxu0 %v1027_v51 }
  0x2d   :  { %964 = vmatpush3.bf16.msra.mxu1 %v1028_v52  ;;  %943 = vmatprep.subr.bf16.mxu0 %v1029_v53 }
  0x2e   :  { %965 = vmatprep.subr.bf16.mxu1 %v1030_v54 }
  0x30   :  { %944 = vmatpush3.bf16.msra.mxu0 %v1031_v55 }
  0x31   :  { %966 = vmatpush3.bf16.msra.mxu1 %v1032_v56  ;;  %945 = vmatprep.subr.bf16.mxu0 %v1033_v57 }
  0x32   :  { %967 = vmatprep.subr.bf16.mxu1 %v1034_v58  ;;  %v769_v58 = vlaneseq }
  0x34   :  { %946 = vmatpush3.bf16.msra.mxu0 %v1035_v59 }
  0x35   :  { %968 = vmatpush3.bf16.msra.mxu1 %v1036_v60  ;;  %947 = vmatprep.subr.bf16.mxu0 %v1037_v61  ;;  %v770_v60 = vand.u32 127, %v769_v58 }
  0x36   :  { %969 = vmatprep.subr.bf16.mxu1 %v1038_v62 }
  0x38   :  { %948 = vmatpush3.bf16.msra.mxu0 %v1039_v63 }
  0x39   :  { %970 = vmatpush3.bf16.msra.mxu1 %v1040_v0  ;;  %949 = vmatprep.subr.bf16.mxu0 %v1041_v1 }
  0x3a   :  { %971 = vmatprep.subr.bf16.mxu1 %v1042_v2 }
  0x3c   :  { %950 = vmatpush3.bf16.msra.mxu0 %v1043_v3 }
  0x3d   :  { %972 = vmatpush3.bf16.msra.mxu1 %v1044_v4  ;;  %951 = vmatprep.subr.bf16.mxu0 %v1045_v5 }
  0x3e   :  { %973 = vmatprep.subr.bf16.mxu1 %v1046_v6 }
  0x40   :  { %952 = vmatpush3.bf16.msra.mxu0 %v1047_v7 }
  0x41   :  { %974 = vmatpush3.bf16.msra.mxu1 %v1048_v8 }
  0x43   :  { %700 = vmatmul.mubr.bf16.vlgmr.msra.gmra.mrb[4].mxu0 %v823_v11  ;;  %v1058_v11 = vmov 0.0  }
  0x44   :  { %741 = vmatmul.mubr.bf16.vlgmr.msra.gmra.mrb[4].mxu1 %v825_v16  ;;  %v891_v12 = vsel %vm787_vm2, 1.0, %v1058_v11  ;;  %v892_v14 = vsel %vm788_vm3, 1.0, %v1058_v11 }
  0x95   :  { %v775_v59 = vpop.permute.xlu1 %774 }
  0x96   :  { %vm779_vm0 = vcmp.eq.s32.totalorder %v770_v60, %v775_v59 }
  0x99   :  { %v778_v62 = vpop.permute.xlu1 %777 }
  0x9a   :  { %vm780_vm1 = vcmp.eq.s32.totalorder %v770_v60, %v778_v62 }
  0xf6   :  { %v909_v19 = vpop.f32.mrb[0].mxu0 }
  0xf7   :  { %v931_v20 = vpop.f32.mrb[0].mxu1  ;;  %v910_v22 = vpop.f32.mrb[1].mxu0 }
  0xf8   :  { %v911_v23 = vadd.f32 %v910_v22, %v909_v19  ;;  %v932_v24 = vpop.f32.mrb[1].mxu1  ;;  %v912_v25 = vpop.f32.mrb[2].mxu0 }
  0xf9   :  { %v933_v26 = vadd.f32 %v932_v24, %v931_v20  ;;  %v934_v27 = vpop.f32.mrb[2].mxu1  ;;  %v913_v28 = vpop.f32.mrb[3].mxu0 }
  0xfa   :  { %v620_v29 = vadd.f32 %v911_v23, %v818_v21  ;;  %v914_v30 = vadd.f32 %v913_v28, %v912_v25  ;;  %v935_v31 = vpop.f32.mrb[3].mxu1 }
  0xfb   :  { %v936_v32 = vadd.f32 %v935_v31, %v934_v27 }
  0xfc   :  { %v661_v33 = vadd.f32 %v933_v26, %v620_v29  ;;  %v623_v34 = vadd.f32 %v914_v30, %v818_v21 }
  0xfe   :  { %v664_v35 = vadd.f32 %v936_v32, %v623_v34 }
 0x116   :  { %v953_v36 = vpop.f32.mrb[4].mxu0 }
 0x117   :  { %v975_v37 = vpop.f32.mrb[4].mxu1  ;;  %v954_v38 = vpop.f32.mrb[5].mxu0 }
 0x118   :  { %v955_v39 = vadd.f32 %v954_v38, %v953_v36  ;;  %v976_v40 = vpop.f32.mrb[5].mxu1  ;;  %v956_v41 = vpop.f32.mrb[6].mxu0 }
 0x119   :  { %v977_v42 = vadd.f32 %v976_v40, %v975_v37  ;;  %v978_v43 = vpop.f32.mrb[6].mxu1  ;;  %v957_v44 = vpop.f32.mrb[7].mxu0 }
 0x11a   :  { %v702_v45 = vadd.f32 %v955_v39, %v661_v33  ;;  %v958_v46 = vadd.f32 %v957_v44, %v956_v41  ;;  %v979_v47 = vpop.f32.mrb[7].mxu1 }
 0x11b   :  { %v980_v48 = vadd.f32 %v979_v47, %v978_v43 }
 0x11c   :  { %v743_v49 = vadd.f32 %v977_v42, %v702_v45  ;;  %v705_v50 = vadd.f32 %v958_v46, %v664_v35 }
 0x11e   :  { %v746_v51 = vadd.f32 %v980_v48, %v705_v50  ;;  %749 = vmax.xlane.f32.xlu0 %v743_v49  ;;  %v781_v0 = vsel %vm779_vm0, %v743_v49, 0.0 }
 0x120   :  { %v782_v1 = vsel %vm780_vm1, %v746_v51, 0.0 }
 0x122   :  { %751 = vmax.xlane.f32.xlu0 %v746_v51 }
 0x1ab   :  { %v750_v52 = vpop.xlane.xlu0 %749 }
 0x1ac   :  { %v753_v53 = vsub.f32 %v743_v49, %v750_v52 }
 0x1ae   :  { %v755_v54 = vmul.f32 1.442695, %v753_v53 }
 0x1af   :  { %v752_v55 = vpop.xlane.xlu0 %751 }
 0x1b0   :  { %1049 = vpow2.f32 %v755_v54  ;;  %v754_v56 = vsub.f32 %v746_v51, %v752_v55 }
 0x1b2   :  { %v757_v57 = vmul.f32 1.442695, %v754_v56 }
 0x1b4   :  { %1051 = vpow2.f32 %v757_v57 }
 0x1ba   :  { %v1050_v61 = vpop.eup %1049 }
 0x1bb   :  { %759 = vadd.xlane.f32.xlu0 %v1050_v61 }
 0x1be   :  { %v1052_v63 = vpop.eup %1051 }
 0x1bf   :  { %761 = vadd.xlane.f32.xlu1 %v1052_v63  ;;  %783 = vadd.xlane.f32.xlu0 %v781_v0 }
 0x1c3   :  { %785 = vadd.xlane.f32.xlu0 %v782_v1 }
 0x248   :  { %v760_v2 = vpop.xlane.xlu0 %759 }
 0x249   :  { %1053 = vlog2.f32 %v760_v2 }
 0x24c   :  { %v762_v3 = vpop.xlane.xlu1 %761  ;;  %v784_v6 = vpop.xlane.xlu0 %783 }
 0x24d   :  { %1055 = vlog2.f32 %v762_v3 }
 0x250   :  { %v786_v16 = vpop.xlane.xlu0 %785 }
 0x253   :  { %v1054_v4 = vpop.eup %1053 }
 0x254   :  { %v764_v5 = vmul.f32 0.6931472, %v1054_v4 }
 0x256   :  { %v767_v7 = vadd.f32 %v764_v5, %v750_v52 }
 0x257   :  { %v1056_v8 = vpop.eup %1055 }
 0x258   :  { %v766_v9 = vmul.f32 0.6931472, %v1056_v8  ;;  %v793_v10 = vsub.f32 %v767_v7, %v784_v6 }
 0x25a   :  { %v768_v13 = vadd.f32 %v766_v9, %v752_v55  ;;  %v795_v17 = vmul.f32 %v891_v12, %v793_v10 }
 0x25c   :  { %v794_v19 = vsub.f32 %v768_v13, %v786_v16  ;;  %v798_v21 = vsel %vm797_vm4, %v795_v17, 0.0 }
 0x25e   :  { %v796_v20 = vmul.f32 %v892_v14, %v794_v19 }
 0x260   :  { %v799_v22 = vsel %vm797_vm4, %v796_v20, 0.0 }
 0x261   :  { %v800_v23 = vadd.f32 %v799_v22, %v798_v21 }
 0x263   :  { %v801_v24 = vrot.slane %v800_v23, 4 }
 0x265   :  { %v802_v15 = vadd.f32 %v801_v24, %v800_v23 }
 0x267   :  { %v803_v25 = vrot.slane %v802_v15, 2 }
 0x269   :  { %v804_v26 = vadd.f32 %v803_v25, %v802_v15 }
 0x26b   :  { %v805_v27 = vrot.slane %v804_v26, 1 }
 0x26d   :  { %v806_v18 = vadd.f32 %v805_v27, %v804_v26 }
 0x26f   :  { %v807_v28 = vmul.f32 0.125, %v806_v18 }
 0x271   :  { %810 = vperm.xlu0 %984, %v807_v28  }
 0x2f0   :  { %v811_v29 = vpop.permute.xlu0 %810 }
 0x2f1   :  { %813 = vst [vmem:[%s1324_s4] sm:$0xff] %v811_v29 }

</bundles_post_ra>
